<compile_context>
chip_gen: v6e
topology: v6e:2x2x1
jax: 0.10.0
libtpu: 0.0.40
codegen_flags: <defaults>
</compile_context>

<pallas_src>
import functools

import numpy as np
import jax
import jax.numpy as jnp
from jax.experimental import pallas as pl
from jax.experimental.pallas import tpu as pltpu


def _dwconv_kernel(x_ref, w_ref, m_ref, o_ref, *, shifts):
    """One row block of the flattened depthwise conv.

    x_ref : (BR, L)   input rows; one row = one (n, c) plane, flattened H*W
    w_ref : (BR, KK)  per-row tap weights (KK = kh*kw)
    m_ref : (KK, L)   per-tap {0,1} boundary masks (shared across rows)
    o_ref : (BR, L)   output rows
    shifts: static per-tap lane-roll amounts (Python ints)
    """
    xv = x_ref[...]                                   # stays in input dtype
    acc = jnp.zeros(o_ref.shape, jnp.float32)
    for t, s in enumerate(shifts):
        # Static lane roll on the XLU; boundary (halo) handled by the mask.
        shifted = pltpu.roll(xv, s, axis=1) if s else xv
        tap = shifted.astype(jnp.float32) * m_ref[t:t + 1, :]      # (BR, L)
        acc = acc + tap * w_ref[:, t:t + 1].astype(jnp.float32)    # VPU FMA
    o_ref[...] = acc.astype(o_ref.dtype)              # lane-dense store


def depthwise_conv2d(x, weight, padding=0, bias=None):
    """x: (N, C, H, W); weight: (C, 1, kH, kW); returns (N, C, Ho, Wo).

    Equivalent to nn.Conv2d(C, C, kernel_size, padding=padding, groups=C,
    bias=bias) forward (stride 1, symmetric padding).
    """
    n, c, h, w = x.shape
    wc, _, kh, kw = weight.shape
    assert wc == c, "depthwise weight must have shape (C, 1, kH, kW)"
    if isinstance(padding, (tuple, list)):
        ph, pw = int(padding[0]), int(padding[1])
    else:
        ph = pw = int(padding)

    ho = h + 2 * ph - kh + 1
    wo = w + 2 * pw - kw + 1
    assert ho >= 1 and wo >= 1, "kernel larger than padded input"
    # TODO(synk): padding > (k-1)//2 (output larger than input) would need a
    # padded-plane variant; the module uses padding<= (k-1)//2 so not needed.
    assert ho <= h and wo <= w, "2*padding > kernel_size-1 not supported"

    r = n * c          # independent depthwise "rows"
    L = h * w          # flattened plane -> lane axis
    kk = kh * kw

    # Static per-tap lane shifts and boundary masks (pure numpy, trace-time).
    pos = np.arange(L)
    hh = pos // w
    ww = pos % w
    shifts = []
    masks_np = np.zeros((kk, L), np.float32)
    for i in range(kh):
        for j in range(kw):
            di, dj = i - ph, j - pw
            d = di * w + dj                       # uniform flat-index offset
            shifts.append((-d) % L)               # roll amount (jnp.roll sense)
            valid = ((hh + di >= 0) & (hh + di < h) &
                     (ww + dj >= 0) & (ww + dj < w))
            masks_np[i * kw + j] = valid.astype(np.float32)

    x2d = x.reshape(r, L)                                  # free reshape (NCHW kept)
    w_rows = jnp.tile(weight.reshape(c, kk), (n, 1))       # (R, KK), ~tiny
    masks = jnp.asarray(masks_np)                          # (KK, L), ~tiny

    # Row-block size: whole R if small, else a multiple of 8 sized to ~2 MiB
    # of f32 so input/output double-buffers + accumulator stay well inside
    # VMEM on every chip (v5e/v6e/v7x).
    rows_for_2mb = max(1, (2 * 1024 * 1024) // (4 * L))
    if rows_for_2mb >= r:
        br = r
    else:
        br = max(8, (rows_for_2mb // 8) * 8)
    grid = (pl.cdiv(r, br),)

    kernel = functools.partial(_dwconv_kernel, shifts=tuple(shifts))

    out2d = pl.pallas_call(
        kernel,
        out_shape=jax.ShapeDtypeStruct((r, L), x.dtype),
        grid_spec=pltpu.PrefetchScalarGridSpec(
            num_scalar_prefetch=0,
            grid=grid,
            in_specs=[
                pl.BlockSpec((br, L), lambda i: (i, 0)),    # activation rows
                pl.BlockSpec((br, kk), lambda i: (i, 0)),   # per-row tap weights
                pl.BlockSpec((kk, L), lambda i: (0, 0)),    # masks, resident
            ],
            out_specs=pl.BlockSpec((br, L), lambda i: (i, 0)),
        ),
        compiler_params=pltpu.CompilerParams(
            dimension_semantics=("parallel",),
            vmem_limit_bytes=64 * 1024 * 1024,
        ),
    )(x2d, w_rows, masks)

    out = out2d.reshape(n, c, h, w)                        # free reshape
    if ho != h or wo != w:                                 # valid-padding case
        out = out[:, :, :ho, :wo]
    if bias is not None:
        out = out + bias.reshape(1, c, 1, 1)
    return out


if __name__ == "__main__":
    # Small shapes consistent with the module: batch=2, channels=4, 16x16
    # spatial, kernel_size=3, padding=1 (output spatial size == input).
    N, C, H, W = 2, 4, 16, 16
    KH = KW = 3
    PAD = 1

    key = jax.random.PRNGKey(0)
    kx, kw_ = jax.random.split(key)
    x = jax.random.normal(kx, (N, C, H, W), dtype=jnp.float32)
    # nn.Conv2d depthwise weight shape: (C, 1, kH, kW).
    weight = jax.random.normal(kw_, (C, 1, KH, KW), dtype=jnp.float32) * 0.1

    out = depthwise_conv2d(x, weight, padding=PAD)
    out = jax.block_until_ready(out)

    # Reference: XLA grouped conv (same semantics as PyTorch depthwise conv).
    ref = jax.lax.conv_general_dilated(
        x, weight,
        window_strides=(1, 1),
        padding=((PAD, PAD), (PAD, PAD)),
        dimension_numbers=("NCHW", "OIHW", "NCHW"),
        feature_group_count=C,
    )
    assert out.shape == ref.shape
    assert jnp.allclose(out, ref, atol=1e-5, rtol=1e-5)

    print("KERNEL_OK")
</pallas_src>

<mosaic_0001>
module attributes {stable_mosaic.version = 11 : i64} {
  func.func @_dwconv_kernel(%arg0: i32, %arg1: memref<8x256xf32, #tpu.memory_space<vmem>>, %arg2: memref<8x9xf32, #tpu.memory_space<vmem>>, %arg3: memref<9x256xf32, #tpu.memory_space<vmem>>, %arg4: memref<8x256xf32, #tpu.memory_space<vmem>>) attributes {dimension_semantics = [#tpu.dimension_semantics<parallel>], iteration_bounds = array<i64: 1>, scalar_prefetch = 0 : i64, scratch_operands = 0 : i64, tpu.core_type = #tpu.core_type<tc>, window_params = [{transform_indices = @transform_0, window_bounds = array<i64: 8, 256>}, {transform_indices = @transform_1, window_bounds = array<i64: 8, 9>}, {pipeline_mode = #tpu.pipeline_mode<synchronous>, transform_indices = @transform_2, window_bounds = array<i64: 9, 256>}, {transform_indices = @transform_3, window_bounds = array<i64: 8, 256>}]} {
    %c0 = arith.constant 0 : index
    %c0_0 = arith.constant 0 : index
    %0 = vector.load %arg1[%c0, %c0_0] : memref<8x256xf32, #tpu.memory_space<vmem>>, vector<8x256xf32>
    %cst = arith.constant 0.000000e+00 : f32
    %1 = vector.broadcast %cst : f32 to vector<8x256xf32>
    %c17_i32 = arith.constant 17 : i32
    %2 = tpu.dynamic_rotate %0 by %c17_i32 dim 1 : vector<8x256xf32>, i32 -> vector<8x256xf32>
    %c0_1 = arith.constant 0 : index
    %c0_2 = arith.constant 0 : index
    %3 = vector.load %arg3[%c0_1, %c0_2] : memref<9x256xf32, #tpu.memory_space<vmem>>, vector<1x256xf32>
    %4 = vector.broadcast %3 : vector<1x256xf32> to vector<8x256xf32>
    %5 = arith.mulf %2, %4 : vector<8x256xf32>
    %c0_3 = arith.constant 0 : index
    %c0_4 = arith.constant 0 : index
    %6 = vector.load %arg2[%c0_3, %c0_4] : memref<8x9xf32, #tpu.memory_space<vmem>>, vector<8x1xf32>
    %7 = vector.broadcast %6 : vector<8x1xf32> to vector<8x256xf32>
    %8 = arith.mulf %5, %7 : vector<8x256xf32>
    %9 = arith.addf %1, %8 : vector<8x256xf32>
    %c16_i32 = arith.constant 16 : i32
    %10 = tpu.dynamic_rotate %0 by %c16_i32 dim 1 : vector<8x256xf32>, i32 -> vector<8x256xf32>
    %c1 = arith.constant 1 : index
    %c0_5 = arith.constant 0 : index
    %11 = vector.load %arg3[%c1, %c0_5] : memref<9x256xf32, #tpu.memory_space<vmem>>, vector<1x256xf32>
    %12 = vector.broadcast %11 : vector<1x256xf32> to vector<8x256xf32>
    %13 = arith.mulf %10, %12 : vector<8x256xf32>
    %c0_6 = arith.constant 0 : index
    %c1_7 = arith.constant 1 : index
    %14 = vector.load %arg2[%c0_6, %c1_7] : memref<8x9xf32, #tpu.memory_space<vmem>>, vector<8x1xf32>
    %15 = vector.broadcast %14 : vector<8x1xf32> to vector<8x256xf32>
    %16 = arith.mulf %13, %15 : vector<8x256xf32>
    %17 = arith.addf %9, %16 : vector<8x256xf32>
    %c15_i32 = arith.constant 15 : i32
    %18 = tpu.dynamic_rotate %0 by %c15_i32 dim 1 : vector<8x256xf32>, i32 -> vector<8x256xf32>
    %c2 = arith.constant 2 : index
    %c0_8 = arith.constant 0 : index
    %19 = vector.load %arg3[%c2, %c0_8] : memref<9x256xf32, #tpu.memory_space<vmem>>, vector<1x256xf32>
    %20 = vector.broadcast %19 : vector<1x256xf32> to vector<8x256xf32>
    %21 = arith.mulf %18, %20 : vector<8x256xf32>
    %c0_9 = arith.constant 0 : index
    %c2_10 = arith.constant 2 : index
    %22 = vector.load %arg2[%c0_9, %c2_10] : memref<8x9xf32, #tpu.memory_space<vmem>>, vector<8x1xf32>
    %23 = vector.broadcast %22 : vector<8x1xf32> to vector<8x256xf32>
    %24 = arith.mulf %21, %23 : vector<8x256xf32>
    %25 = arith.addf %17, %24 : vector<8x256xf32>
    %c1_i32 = arith.constant 1 : i32
    %26 = tpu.dynamic_rotate %0 by %c1_i32 dim 1 : vector<8x256xf32>, i32 -> vector<8x256xf32>
    %c3 = arith.constant 3 : index
    %c0_11 = arith.constant 0 : index
    %27 = vector.load %arg3[%c3, %c0_11] : memref<9x256xf32, #tpu.memory_space<vmem>>, vector<1x256xf32>
    %28 = vector.broadcast %27 : vector<1x256xf32> to vector<8x256xf32>
    %29 = arith.mulf %26, %28 : vector<8x256xf32>
    %c0_12 = arith.constant 0 : index
    %c3_13 = arith.constant 3 : index
    %30 = vector.load %arg2[%c0_12, %c3_13] : memref<8x9xf32, #tpu.memory_space<vmem>>, vector<8x1xf32>
    %31 = vector.broadcast %30 : vector<8x1xf32> to vector<8x256xf32>
    %32 = arith.mulf %29, %31 : vector<8x256xf32>
    %33 = arith.addf %25, %32 : vector<8x256xf32>
    %c4 = arith.constant 4 : index
    %c0_14 = arith.constant 0 : index
    %34 = vector.load %arg3[%c4, %c0_14] : memref<9x256xf32, #tpu.memory_space<vmem>>, vector<1x256xf32>
    %35 = vector.broadcast %34 : vector<1x256xf32> to vector<8x256xf32>
    %36 = arith.mulf %0, %35 : vector<8x256xf32>
    %c0_15 = arith.constant 0 : index
    %c4_16 = arith.constant 4 : index
    %37 = vector.load %arg2[%c0_15, %c4_16] : memref<8x9xf32, #tpu.memory_space<vmem>>, vector<8x1xf32>
    %38 = vector.broadcast %37 : vector<8x1xf32> to vector<8x256xf32>
    %39 = arith.mulf %36, %38 : vector<8x256xf32>
    %40 = arith.addf %33, %39 : vector<8x256xf32>
    %c255_i32 = arith.constant 255 : i32
    %41 = tpu.dynamic_rotate %0 by %c255_i32 dim 1 : vector<8x256xf32>, i32 -> vector<8x256xf32>
    %c5 = arith.constant 5 : index
    %c0_17 = arith.constant 0 : index
    %42 = vector.load %arg3[%c5, %c0_17] : memref<9x256xf32, #tpu.memory_space<vmem>>, vector<1x256xf32>
    %43 = vector.broadcast %42 : vector<1x256xf32> to vector<8x256xf32>
    %44 = arith.mulf %41, %43 : vector<8x256xf32>
    %c0_18 = arith.constant 0 : index
    %c5_19 = arith.constant 5 : index
    %45 = vector.load %arg2[%c0_18, %c5_19] : memref<8x9xf32, #tpu.memory_space<vmem>>, vector<8x1xf32>
    %46 = vector.broadcast %45 : vector<8x1xf32> to vector<8x256xf32>
    %47 = arith.mulf %44, %46 : vector<8x256xf32>
    %48 = arith.addf %40, %47 : vector<8x256xf32>
    %c241_i32 = arith.constant 241 : i32
    %49 = tpu.dynamic_rotate %0 by %c241_i32 dim 1 : vector<8x256xf32>, i32 -> vector<8x256xf32>
    %c6 = arith.constant 6 : index
    %c0_20 = arith.constant 0 : index
    %50 = vector.load %arg3[%c6, %c0_20] : memref<9x256xf32, #tpu.memory_space<vmem>>, vector<1x256xf32>
    %51 = vector.broadcast %50 : vector<1x256xf32> to vector<8x256xf32>
    %52 = arith.mulf %49, %51 : vector<8x256xf32>
    %c0_21 = arith.constant 0 : index
    %c6_22 = arith.constant 6 : index
    %53 = vector.load %arg2[%c0_21, %c6_22] : memref<8x9xf32, #tpu.memory_space<vmem>>, vector<8x1xf32>
    %54 = vector.broadcast %53 : vector<8x1xf32> to vector<8x256xf32>
    %55 = arith.mulf %52, %54 : vector<8x256xf32>
    %56 = arith.addf %48, %55 : vector<8x256xf32>
    %c240_i32 = arith.constant 240 : i32
    %57 = tpu.dynamic_rotate %0 by %c240_i32 dim 1 : vector<8x256xf32>, i32 -> vector<8x256xf32>
    %c7 = arith.constant 7 : index
    %c0_23 = arith.constant 0 : index
    %58 = vector.load %arg3[%c7, %c0_23] : memref<9x256xf32, #tpu.memory_space<vmem>>, vector<1x256xf32>
    %59 = vector.broadcast %58 : vector<1x256xf32> to vector<8x256xf32>
    %60 = arith.mulf %57, %59 : vector<8x256xf32>
    %c0_24 = arith.constant 0 : index
    %c7_25 = arith.constant 7 : index
    %61 = vector.load %arg2[%c0_24, %c7_25] : memref<8x9xf32, #tpu.memory_space<vmem>>, vector<8x1xf32>
    %62 = vector.broadcast %61 : vector<8x1xf32> to vector<8x256xf32>
    %63 = arith.mulf %60, %62 : vector<8x256xf32>
    %64 = arith.addf %56, %63 : vector<8x256xf32>
    %c239_i32 = arith.constant 239 : i32
    %65 = tpu.dynamic_rotate %0 by %c239_i32 dim 1 : vector<8x256xf32>, i32 -> vector<8x256xf32>
    %c8 = arith.constant 8 : index
    %c0_26 = arith.constant 0 : index
    %66 = vector.load %arg3[%c8, %c0_26] : memref<9x256xf32, #tpu.memory_space<vmem>>, vector<1x256xf32>
    %67 = vector.broadcast %66 : vector<1x256xf32> to vector<8x256xf32>
    %68 = arith.mulf %65, %67 : vector<8x256xf32>
    %c0_27 = arith.constant 0 : index
    %c8_28 = arith.constant 8 : index
    %69 = vector.load %arg2[%c0_27, %c8_28] : memref<8x9xf32, #tpu.memory_space<vmem>>, vector<8x1xf32>
    %70 = vector.broadcast %69 : vector<8x1xf32> to vector<8x256xf32>
    %71 = arith.mulf %68, %70 : vector<8x256xf32>
    %72 = arith.addf %64, %71 : vector<8x256xf32>
    %c0_29 = arith.constant 0 : index
    %c0_30 = arith.constant 0 : index
    %73 = vector.load %arg4[%c0_29, %c0_30] : memref<8x256xf32, #tpu.memory_space<vmem>>, vector<8x256xf32>
    tpu.vector_store %arg4[%c0_29, %c0_30], %72 {strides = array<i32>} : memref<8x256xf32, #tpu.memory_space<vmem>>, vector<8x256xf32>,
    return
  }
  func.func @transform_0(%arg0: i32) -> (i32, i32) {
    %c0_i32 = arith.constant 0 : i32
    %c0_i32_0 = arith.constant 0 : i32
    return %arg0, %c0_i32 : i32, i32
  }
  func.func @transform_1(%arg0: i32) -> (i32, i32) {
    %c0_i32 = arith.constant 0 : i32
    %c0_i32_0 = arith.constant 0 : i32
    return %arg0, %c0_i32 : i32, i32
  }
  func.func @transform_2(%arg0: i32) -> (i32, i32) {
    %c0_i32 = arith.constant 0 : i32
    %c0_i32_0 = arith.constant 0 : i32
    %c0_i32_1 = arith.constant 0 : i32
    return %c0_i32, %c0_i32_0 : i32, i32
  }
  func.func @transform_3(%arg0: i32) -> (i32, i32) {
    %c0_i32 = arith.constant 0 : i32
    %c0_i32_0 = arith.constant 0 : i32
    return %arg0, %c0_i32 : i32, i32
  }
}

</mosaic_0001>

<bundles_post_ra>
// kernel: tpu_custom_call.1
= control target key start
LH: loop header
LB: loop body
LE: loop exit
PB: predicated region body
PF: predicated region fallthrough
CT: control target
= control target key end

     0   :  { %8 = vsyncpa [#allocation3], 0  ;;  %s603_s0 = inlined_call_operand.hbm [shape: f32[8,256], index: 0, kind: input, shape index: {}]   ;;  %s604_s1 = inlined_call_operand.hbm [shape: f32[8,9], index: 1, kind: input, shape index: {}]   ;;  %s605_s2 = inlined_call_operand.hbm [shape: f32[9,256], index: 2, kind: input, shape index: {}]   ;;  %s606_s3 = inlined_call_operand.hbm [shape: f32[8,256], index: 3, kind: output, shape index: {}]  }
   0x1   :  { %9 = vsyncpa [#allocation6], 0 }
   0x2   :  { %10 = vsyncpa [#allocation4], 0  ;;  %s455_s12 = smov [#allocation5]   ;;  %s456_s14 = smov [#allocation2]  }
   0x3   :  { %s27_s13 = sshll.u32 %s455_s12, 4  ;;  %s17_s15 = sshll.u32 %s456_s14, 4  ;;  %s28_s13 = int_to_ptr.vmem [resolvable:$true] %s27_s13  ;;  %s18_s15 = int_to_ptr.vmem [resolvable:$true] %s17_s15 }
   0x4   :  { %s377_s16 = scalar_lea.vmem %s28_s13, 128  ;;  %p382_p1 = scmp.lt.s32.totalorder %s28_s13, %s28_s13 }
   0x5   :  { %p378_p0 = scmp.ne.s32.totalorder %s28_s13, %s377_s16  ;;  %p383_p2 = scmp.lt.s32.totalorder %s377_s16, %s377_s16 }
   0x7   :  { %p384_p3 = por %p383_p2, %p382_p1 }
   0x9   :  { %p385_p4 = pnand %p384_p3, %p378_p0 }
   0xb   :  { %388 = shalt.err (!%p385_p4)
}
   0xc   :  { %30 = dma.hbm_to_vmem [thread:$0]  %s604_s1, 128, %s28_s13, [#allocation6]  }
   0xd   :  { %s397_s19 = scalar_lea.vmem %s18_s15, 256  ;;  %p402_p6 = scmp.lt.s32.totalorder %s18_s15, %s18_s15 }
   0xe   :  { %p398_p5 = scmp.ne.s32.totalorder %s18_s15, %s397_s19  ;;  %p403_p7 = scmp.lt.s32.totalorder %s397_s19, %s397_s19 }
  0x10   :  { %p404_p8 = por %p403_p7, %p402_p6 }
  0x12   :  { %p405_p9 = pnand %p404_p8, %p398_p5 }
  0x14   :  { %408 = shalt.err (!%p405_p9)
}
  0x15   :  { %20 = dma.hbm_to_vmem [thread:$0]  %s603_s0, 256, %s18_s15, [#allocation3]  }
  0x16   :  { %s457_s22 = smov [#allocation7]  }
  0x17   :  { %s36_s23 = sshll.u32 %s457_s22, 4  ;;  %s37_s23 = int_to_ptr.vmem [resolvable:$true] %s36_s23 }
  0x18   :  { %s417_s24 = scalar_lea.vmem %s37_s23, 512  ;;  %p422_p11 = scmp.lt.s32.totalorder %s37_s23, %s37_s23 }
  0x19   :  { %p418_p10 = scmp.ne.s32.totalorder %s37_s23, %s417_s24  ;;  %p423_p12 = scmp.lt.s32.totalorder %s417_s24, %s417_s24 }
  0x1b   :  { %p424_p13 = por %p423_p12, %p422_p11 }
  0x1d   :  { %p425_p0 = pnand %p424_p13, %p418_p10 }
  0x1f   :  { %428 = shalt.err (!%p425_p0)
}
  0x20   :  { %s458_s1 = smov 256   ;;  %s459_s25 = smov 16  }
  0x21   :  { %42 = dma.hbm_to_vmem [thread:$0]  %s605_s2, 512, %s37_s23, [#allocation6], %s458_s1, %s458_s1, %s459_s25  }
  0x22   :  { %449 = dma.done.wait [#allocation3], 256  }
  0x23   :  { %450 = vsyncadd [#allocation3], 4294967040 }
  0x24   :  { %451 = dma.done.wait [#allocation6], 640  }
  0x25   :  { %452 = vsyncadd [#allocation6], 4294966656  ;;  %v460_v0 = vmov 0   ;;  %v461_v1 = vmov 2   ;;  %v77_v2 = vld [vmem:[#allocation5] sm:$0xff]  ;;  %v506_v3 = vld [vmem:[#allocation2] sm:$0xff]  ;;  %v58_v21 = vlaneseq }
  0x26   :  { %360 = vset.pattern.permute.xlu0 %v460_v0  ;;  %362 = vset.pattern.permute.xlu1 %v461_v1  ;;  %s462_s0 = smov 17   ;;  %v509_v4 = vld [vmem:[#allocation2 + $0x8] sm:$0xff]  ;;  %v463_v5 = vmov 1   ;;  %v464_v6 = vmov 3   ;;  %s465_s2 = smov 15   ;;  %v466_v7 = vmov 5  }
  0x27   :  { %80 = vperm.xlu0 %360, %v77_v2   ;;  %54 = vrot.lane.b32.xlu1 %v506_v3, %s462_s0  ;;  %s467_s28 = smov 1   ;;  %v468_v8 = vmov 4   ;;  %s469_s29 = smov 127   ;;  %v470_v9 = vmov 7   ;;  %v472_v10 = vmov 6   ;;  %v473_v11 = vmov 8  }
  0x28   :  { %s471_s30 = smov 113   ;;  %s474_s4 = smov 112   ;;  %v66_v24 = vshrl.u32 %v58_v21, 7  ;;  %v530_v25 = vand.u32 127, %v58_v21 }
  0x29   :  { %s475_s5 = smov 111   ;;  %v63_v30 = vld [vmem:[#allocation7] ss:$8 sm:$0x3]  ;;  %s476_s6 = smov [#allocation8]  }
  0x2a   :  { %v536_v28 = vsub.s32 0, %v66_v24  ;;  %v538_v29 = vsub.s32 1, %v66_v24  ;;  %v95_v31 = vld [vmem:[#allocation7 + $0x1] ss:$8 sm:$0x3]  ;;  %vm60_vm0 = vcmp.lt.s32.totalorder %v530_v25, 17 }
  0x2b   :  { %361 = vset.pattern.permute.xlu0 %v463_v5  ;;  %56 = vrot.lane.b32.xlu1 %v509_v4, %s462_s0  ;;  %vm91_vm1 = vcmp.lt.s32.totalorder %v530_v25, 16  ;;  %v125_v32 = vld [vmem:[#allocation7 + $0x2] ss:$8 sm:$0x3]  ;;  %vm121_vm2 = vcmp.lt.s32.totalorder %v530_v25, 15  ;;  %vm151_vm3 = vcmp.lt.s32.totalorder %v530_v25, 1 }
  0x2c   :  { %110 = vperm.xlu0 %361, %v77_v2   ;;  %v155_v34 = vld [vmem:[#allocation7 + $0x3] ss:$8 sm:$0x3]  ;;  %v178_v35 = vld [vmem:[#allocation7 + $0x4] ss:$8 sm:$0x3]  ;;  %v68_v36 = vrot.slane %v63_v30, %v536_v28  ;;  %v100_v37 = vrot.slane %v95_v31, %v536_v28  ;;  %v104_v38 = vrot.slane %v95_v31, %v538_v29  ;;  %v72_v40 = vrot.slane %v63_v30, %v538_v29 }
  0x2d   :  { %v130_v43 = vrot.slane %v125_v32, %v536_v28  ;;  %v134_v44 = vrot.slane %v125_v32, %v538_v29  ;;  %v160_v45 = vrot.slane %v155_v34, %v536_v28  ;;  %v187_v46 = vrot.slane %v178_v35, %v538_v29  ;;  %v208_v62 = vld [vmem:[#allocation7 + $0x5] ss:$8 sm:$0x3]  ;;  %v238_v63 = vld [vmem:[#allocation7 + $0x6] ss:$8 sm:$0x3] }
  0x2e   :  { %v164_v50 = vrot.slane %v155_v34, %v538_v29  ;;  %v183_v51 = vrot.slane %v178_v35, %v536_v28  ;;  %vm204_vm4 = vcmp.lt.s32.totalorder %v530_v25, 127  ;;  %vm234_vm5 = vcmp.lt.s32.totalorder %v530_v25, 113  ;;  %s328_s7 = sshll.u32 %s476_s6, 4  ;;  %s329_s7 = int_to_ptr.vmem [resolvable:$true] %s328_s7 }
  0x2f   :  { %87 = vrot.lane.b32.xlu1 %v506_v3, %s459_s25  ;;  %v191_v60 = vmul.f32 %v187_v46, %v509_v4  ;;  %vm264_vm6 = vcmp.lt.s32.totalorder %v530_v25, 112  ;;  %vm294_vm7 = vcmp.lt.s32.totalorder %v530_v25, 111  ;;  %s429_s8 = scalar_lea.vmem %s329_s7, 256  ;;  %p434_p2 = scmp.lt.s32.totalorder %s329_s7, %s329_s7 }
  0x30   :  { %89 = vrot.lane.b32.xlu0 %v509_v4, %s459_s25  ;;  %v190_v5 = vmul.f32 %v183_v51, %v506_v3  ;;  %p430_p1 = scmp.ne.s32.totalorder %s329_s7, %s429_s8  ;;  %p435_p3 = scmp.lt.s32.totalorder %s429_s8, %s429_s8 }
  0x31   :  { %363 = vset.pattern.permute.xlu0 %v464_v6 }
  0x32   :  { %p436_p4 = por %p435_p3, %p434_p2 }
  0x33   :  { %140 = vperm.xlu1 %362, %v77_v2  }
  0x34   :  { %117 = vrot.lane.b32.xlu0 %v506_v3, %s465_s2  ;;  %p437_p5 = pnand %p436_p4, %p430_p1 }
  0x37   :  { %119 = vrot.lane.b32.xlu1 %v509_v4, %s465_s2 }
  0x38   :  { %170 = vperm.xlu0 %363, %v77_v2   ;;  %365 = vset.pattern.permute.xlu1 %v466_v7 }
  0x3b   :  { %147 = vrot.lane.b32.xlu1 %v506_v3, %s467_s28 }
  0x3c   :  { %364 = vset.pattern.permute.xlu0 %v468_v8 }
  0x3d   :  { %193 = vperm.xlu0 %364, %v77_v2  }
  0x3f   :  { %149 = vrot.lane.b32.xlu1 %v509_v4, %s467_s28 }
  0x41   :  { %202 = vrot.lane.b32.xlu0 %v509_v4, %s469_s29 }
  0x42   :  { %367 = vset.pattern.permute.xlu0 %v470_v9 }
  0x43   :  { %223 = vperm.xlu1 %365, %v77_v2  }
  0x45   :  { %230 = vrot.lane.b32.xlu0 %v506_v3, %s471_s30 }
  0x47   :  { %200 = vrot.lane.b32.xlu1 %v506_v3, %s469_s29 }
  0x48   :  { %366 = vset.pattern.permute.xlu1 %v472_v10  ;;  %v213_v10 = vrot.slane %v208_v62, %v536_v28 }
  0x49   :  { %283 = vperm.xlu0 %367, %v77_v2  }
  0x4b   :  { %253 = vperm.xlu1 %366, %v77_v2  }
  0x4d   :  { %368 = vset.pattern.permute.xlu0 %v473_v11  ;;  %v217_v11 = vrot.slane %v208_v62, %v538_v29 }
  0x4e   :  { %313 = vperm.xlu0 %368, %v77_v2  }
  0x4f   :  { %232 = vrot.lane.b32.xlu1 %v509_v4, %s471_s30 }
  0x53   :  { %260 = vrot.lane.b32.xlu1 %v506_v3, %s474_s4 }
  0x57   :  { %262 = vrot.lane.b32.xlu1 %v509_v4, %s474_s4 }
  0x5b   :  { %290 = vrot.lane.b32.xlu1 %v506_v3, %s475_s5 }
  0x5f   :  { %292 = vrot.lane.b32.xlu1 %v509_v4, %s475_s5  ;;  %v243_v4 = vrot.slane %v238_v63, %v536_v28 }
  0x99   :  { %v55_v12 = vpop.permute.xlu1 %54 }
  0x9d   :  { %v57_v13 = vpop.permute.xlu1 %56 }
  0x9e   :  { %v61_v52 = vsel %vm60_vm0, %v55_v12, %v57_v13  ;;  %v62_v53 = vsel %vm60_vm0, %v57_v13, %v55_v12 }
  0x9f   :  { %v75_v1 = vmul.f32 %v68_v36, %v62_v53  ;;  %v76_v2 = vmul.f32 %v72_v40, %v61_v52 }
  0xa1   :  { %v88_v14 = vpop.permute.xlu1 %87 }
  0xa2   :  { %v526_v15 = vpop.permute.xlu0 %80 }
  0xa3   :  { %v83_v12 = vmul.f32 %v526_v15, %v75_v1  ;;  %v84_v13 = vmul.f32 %v526_v15, %v76_v2 }
  0xa7   :  { %v111_v17 = vpop.permute.xlu0 %110 }
  0xab   :  { %v90_v19 = vpop.permute.xlu0 %89 }
  0xac   :  { %v92_v41 = vsel %vm91_vm1, %v88_v14, %v90_v19  ;;  %v93_v42 = vsel %vm91_vm1, %v90_v19, %v88_v14  ;;  %v268_v19 = vld [vmem:[#allocation7 + $0x7] ss:$8 sm:$0x3] }
  0xad   :  { %v107_v54 = vmul.f32 %v100_v37, %v93_v42  ;;  %v108_v55 = vmul.f32 %v104_v38, %v92_v41  ;;  %v273_v32 = vrot.slane %v268_v19, %v536_v28 }
  0xae   :  { %v528_v16 = vpop.permute.xlu1 %140 }
  0xaf   :  { %v118_v22 = vpop.permute.xlu0 %117  ;;  %v113_v6 = vmul.f32 %v111_v17, %v107_v54  ;;  %v114_v7 = vmul.f32 %v111_v17, %v108_v55 }
  0xb1   :  { %v116_v24 = vadd.f32 %v114_v7, %v84_v13 }
  0xb2   :  { %v120_v18 = vpop.permute.xlu1 %119 }
  0xb3   :  { %v532_v26 = vpop.permute.xlu0 %170  ;;  %v122_v48 = vsel %vm121_vm2, %v118_v22, %v120_v18  ;;  %v123_v49 = vsel %vm121_vm2, %v120_v18, %v118_v22  ;;  %v247_v22 = vrot.slane %v238_v63, %v538_v29 }
  0xb4   :  { %v137_v58 = vmul.f32 %v130_v43, %v123_v49  ;;  %v138_v59 = vmul.f32 %v134_v44, %v122_v48  ;;  %v298_v48 = vld [vmem:[#allocation7 + $0x10] ss:$8 sm:$0x3] }
  0xb5   :  { %v307_v55 = vrot.slane %v298_v48, %v538_v29 }
  0xb6   :  { %v148_v20 = vpop.permute.xlu1 %147  ;;  %v143_v3 = vmul.f32 %v528_v16, %v137_v58  ;;  %v144_v14 = vmul.f32 %v528_v16, %v138_v59 }
  0xb8   :  { %v546_v39 = vpop.permute.xlu0 %193  ;;  %v146_v35 = vadd.f32 %v144_v14, %v116_v24 }
  0xb9   :  { %v196_v40 = vmul.f32 %v546_v39, %v190_v5  ;;  %v197_v41 = vmul.f32 %v546_v39, %v191_v60  ;;  %v303_v39 = vrot.slane %v298_v48, %v536_v28 }
  0xba   :  { %v150_v23 = vpop.permute.xlu1 %149 }
  0xbb   :  { %v152_v56 = vsel %vm151_vm3, %v148_v20, %v150_v23  ;;  %v153_v57 = vsel %vm151_vm3, %v150_v23, %v148_v20  ;;  %v115_v23 = vadd.f32 %v113_v6, %v83_v12 }
  0xbc   :  { %v203_v61 = vpop.permute.xlu0 %202  ;;  %v167_v8 = vmul.f32 %v160_v45, %v153_v57  ;;  %v168_v9 = vmul.f32 %v164_v50, %v152_v56 }
  0xbd   :  { %v145_v34 = vadd.f32 %v143_v3, %v115_v23 }
  0xbe   :  { %v534_v27 = vpop.permute.xlu1 %223  ;;  %v173_v15 = vmul.f32 %v532_v26, %v167_v8  ;;  %v174_v30 = vmul.f32 %v532_v26, %v168_v9 }
  0xc0   :  { %v231_v18 = vpop.permute.xlu0 %230  ;;  %v175_v43 = vadd.f32 %v173_v15, %v145_v34  ;;  %v176_v44 = vadd.f32 %v174_v30, %v146_v35 }
  0xc2   :  { %v201_v33 = vpop.permute.xlu1 %200  ;;  %v198_v56 = vadd.f32 %v196_v40, %v175_v43  ;;  %v199_v57 = vadd.f32 %v197_v41, %v176_v44 }
  0xc3   :  { %v205_v20 = vsel %vm204_vm4, %v201_v33, %v203_v61  ;;  %v206_v21 = vsel %vm204_vm4, %v203_v61, %v201_v33  ;;  %v277_v33 = vrot.slane %v268_v19, %v538_v29 }
  0xc4   :  { %v220_v36 = vmul.f32 %v213_v10, %v205_v20  ;;  %v221_v37 = vmul.f32 %v217_v11, %v206_v21  ;;  %v284_v54 = vpop.permute.xlu0 %283 }
  0xc6   :  { %v554_v47 = vpop.permute.xlu1 %253  ;;  %v226_v49 = vmul.f32 %v534_v27, %v220_v36  ;;  %v227_v50 = vmul.f32 %v534_v27, %v221_v37 }
  0xc8   :  { %v228_v60 = vadd.f32 %v226_v49, %v198_v56  ;;  %v229_v61 = vadd.f32 %v227_v50, %v199_v57 }
  0xc9   :  { %v314_v2 = vpop.permute.xlu0 %313 }
  0xca   :  { %v233_v0 = vpop.permute.xlu1 %232 }
  0xcb   :  { %v235_v16 = vsel %vm234_vm5, %v231_v18, %v233_v0  ;;  %v236_v31 = vsel %vm234_vm5, %v233_v0, %v231_v18 }
  0xcc   :  { %v250_v45 = vmul.f32 %v243_v4, %v235_v16  ;;  %v251_v46 = vmul.f32 %v247_v22, %v236_v31 }
  0xce   :  { %v261_v17 = vpop.permute.xlu1 %260  ;;  %v256_v58 = vmul.f32 %v554_v47, %v250_v45  ;;  %v257_v59 = vmul.f32 %v554_v47, %v251_v46 }
  0xd0   :  { %v258_v5 = vadd.f32 %v256_v58, %v228_v60  ;;  %v259_v25 = vadd.f32 %v257_v59, %v229_v61 }
  0xd2   :  { %v263_v38 = vpop.permute.xlu1 %262 }
  0xd3   :  { %v265_v26 = vsel %vm264_vm6, %v261_v17, %v263_v38  ;;  %v266_v42 = vsel %vm264_vm6, %v263_v38, %v261_v17 }
  0xd4   :  { %v280_v51 = vmul.f32 %v273_v32, %v265_v26  ;;  %v281_v52 = vmul.f32 %v277_v33, %v266_v42 }
  0xd6   :  { %v291_v53 = vpop.permute.xlu1 %290  ;;  %v286_v62 = vmul.f32 %v284_v54, %v280_v51  ;;  %v287_v27 = vmul.f32 %v284_v54, %v281_v52 }
  0xd8   :  { %v288_v29 = vadd.f32 %v286_v62, %v258_v5  ;;  %v289_v7 = vadd.f32 %v287_v27, %v259_v25 }
  0xda   :  { %v293_v63 = vpop.permute.xlu1 %292 }
  0xdb   :  { %v295_v0 = vsel %vm294_vm7, %v291_v53, %v293_v63  ;;  %v296_v1 = vsel %vm294_vm7, %v293_v63, %v291_v53 }
  0xdc   :  { %v310_v6 = vmul.f32 %v303_v39, %v295_v0  ;;  %v311_v28 = vmul.f32 %v307_v55, %v296_v1 }
  0xde   :  { %v316_v8 = vmul.f32 %v314_v2, %v310_v6  ;;  %v317_v9 = vmul.f32 %v314_v2, %v311_v28 }
  0xe0   :  { %v318_v10 = vadd.f32 %v316_v8, %v288_v29  ;;  %v319_v47 = vadd.f32 %v317_v9, %v289_v7 }
  0xe2   :  { %320 = vst [vmem:[#allocation8] sm:$0xff] %v318_v10  ;;  %321 = vst [vmem:[#allocation8 + $0x8] sm:$0xff] %v319_v47 }
  0xe3   :  { %440 = shalt.err (!%p437_p5)
}
  0xe4   :  { %331 = dma.vmem_to_hbm [thread:$0]  %s329_s7, 256, %s606_s3, [#allocation4]  }
  0xe5   :  { %453 = dma.done.wait [#allocation4], 256  }
  0xe6   :  { %454 = vsyncadd [#allocation4], 4294967040 }
  0xe7   :  { %335 = vsyncpa [#allocation3], 1 }
  0xe8   :  { %336 = vsyncpa [#allocation6], 1 }
  0xe9   :  { %337 = vsyncpa [#allocation4], 1 }

</bundles_post_ra>
